<compile_context>
chip_gen: v7x
topology: tpu7x:2x2x1
jax: 0.10.0
libtpu: 0.0.40
codegen_flags: <defaults>
</compile_context>

<pallas_src>
import math
import functools

import jax
import jax.numpy as jnp
from jax.experimental import pallas as pl
from jax.experimental.pallas import tpu as pltpu

VMEM_SPEC = pl.BlockSpec(memory_space=pltpu.MemorySpace.VMEM)
# Raise the scoped-VMEM limit above the 32 MiB default (still <= v7x's 64 MiB
# physical) so whole-array blocks keep working for moderately larger N.
CP = pltpu.CompilerParams(vmem_limit_bytes=64 * 1024 * 1024)

NUM_FEATURES = 1
NHID = 128
NUM_CLASSES = 32
POOL_RATIO = 0.25
LANE = 128


# --------------------------- in-kernel helpers -------------------------------

def _norm_terms(adj_ref):
    """A_hat = A + I and D^{-1/2}, computed in-kernel from the raw adjacency."""
    n = adj_ref.shape[0]
    eye = (jax.lax.broadcasted_iota(jnp.int32, (n, n), 0)
           == jax.lax.broadcasted_iota(jnp.int32, (n, n), 1))
    a_hat = adj_ref[...] + eye.astype(adj_ref.dtype)              # bf16
    deg = jnp.sum(a_hat.astype(jnp.float32), axis=-1, keepdims=True)
    dinv = jax.lax.rsqrt(deg)                                     # deg >= 1 (self-loop)
    return a_hat, dinv


def _gcn_apply(a_hat, dinv, y):
    # A_norm @ y  ==  dinv * (A_hat @ (dinv * y)); bf16 MXU operands, f32 accumulate.
    z = (dinv * y).astype(jnp.bfloat16)
    return dinv * jnp.dot(a_hat, z, preferred_element_type=jnp.float32)


def _readout(xg, num_graphs):
    # concat([global_max_pool, global_mean_pool], dim=1) for contiguous equal-size graphs.
    m = xg.shape[0]
    k = m // num_graphs
    maxs, means = [], []
    for g in range(num_graphs):                                   # static unroll
        blk = xg[g * k:(g + 1) * k, :]
        maxs.append(jnp.max(blk, axis=0, keepdims=True))
        means.append(jnp.mean(blk, axis=0, keepdims=True))
    return jnp.concatenate(
        [jnp.concatenate(maxs, axis=0), jnp.concatenate(means, axis=0)], axis=1)


# ----------------------------- Pallas kernels --------------------------------

def _conv1_score_kernel(adj_ref, x_ref, w1_ref, b1_ref, ws_ref, bs_ref,
                        h_ref, s_ref):
    a_hat, dinv = _norm_terms(adj_ref)
    # conv1: F_in == 1 -> X @ W1 is a VPU broadcast multiply, no K=1 MXU pass.
    xw = x_ref[...] * w1_ref[...]                                 # [N,1]*[1,H] -> [N,H]
    h = jnp.maximum(_gcn_apply(a_hat, dinv, xw) + b1_ref[...], 0.0)
    h_ref[...] = h
    # pool1 score (GCNConv H->1): h @ w_s as a VPU multiply + lane reduction.
    s_pre = jnp.sum(h * ws_ref[...], axis=-1, keepdims=True)      # [N,1]
    s_ref[...] = _gcn_apply(a_hat, dinv, s_pre) + bs_ref[...]


def _gate_ro_conv_kernel(adj_ref, x_ref, s_ref, w_ref, b_ref, ws_ref, bs_ref,
                         ro_ref, h_ref, so_ref, *, num_graphs):
    xg = x_ref[...] * jnp.tanh(s_ref[...])                        # SAGPool gating
    ro_ref[...] = _readout(xg, num_graphs)                        # [max | mean] per graph
    a_hat, dinv = _norm_terms(adj_ref)
    xw = jnp.dot(xg.astype(jnp.bfloat16), w_ref[...].astype(jnp.bfloat16),
                 preferred_element_type=jnp.float32)              # conv2: X @ W2
    h = jnp.maximum(_gcn_apply(a_hat, dinv, xw) + b_ref[...], 0.0)
    h_ref[...] = h
    s_pre = jnp.sum(h * ws_ref[...], axis=-1, keepdims=True)      # pool2 score matvec
    so_ref[...] = _gcn_apply(a_hat, dinv, s_pre) + bs_ref[...]


def _gate_ro_mlp_kernel(x_ref, s_ref, ro1_ref, gi_ref,
                        w1a_ref, w1b_ref, b1_ref, w2_ref, b2_ref,
                        w3p_ref, b3p_ref, o_ref, *, num_graphs):
    xg = x_ref[...] * jnp.tanh(s_ref[...])                        # SAGPool gating (pool2)
    feat = ro1_ref[...] + _readout(xg, num_graphs)                # x1 + x2, [B, 2H]
    # lin1 split as feat@W1a + ginfo@W1b to keep contractions 128-lane aligned.
    h = (jnp.dot(feat, w1a_ref[...], preferred_element_type=jnp.float32)
         + jnp.dot(gi_ref[...], w1b_ref[...], preferred_element_type=jnp.float32)
         + b1_ref[...])
    h = jnp.maximum(h, 0.0)
    # TODO(synk): F.dropout(p=0.25) is identity here (module run in eval mode).
    h = jnp.maximum(
        jnp.dot(h, w2_ref[...], preferred_element_type=jnp.float32) + b2_ref[...], 0.0)
    # lin3 padded to 128 lanes (zero weight cols, -1e30 bias) -> lane-dense store;
    # the padded lanes vanish under log_softmax and are sliced off outside.
    logits = jnp.dot(h, w3p_ref[...], preferred_element_type=jnp.float32) + b3p_ref[...]
    m = jnp.max(logits, axis=-1, keepdims=True)
    z = logits - m
    lse = jnp.log(jnp.sum(jnp.exp(z), axis=-1, keepdims=True))
    o_ref[...] = z - lse                                          # log_softmax(dim=-1)


# ------------------------------- wrappers -------------------------------------

def conv1_pool1(adj_bf, x, p):
    n = x.shape[0]
    return pl.pallas_call(
        _conv1_score_kernel,
        out_shape=(jax.ShapeDtypeStruct((n, NHID), jnp.float32),
                   jax.ShapeDtypeStruct((n, 1), jnp.float32)),
        in_specs=[VMEM_SPEC] * 6,
        out_specs=(VMEM_SPEC, VMEM_SPEC),
        compiler_params=CP,
    )(adj_bf, x,
      p["conv1_w"], p["conv1_b"].reshape(1, NHID),
      p["pool1_w"].reshape(1, NHID), p["pool1_b"].reshape(1, 1))


def gate_ro_conv2_pool2(adj_bf, x_sel, s_sel, p, num_graphs):
    m = x_sel.shape[0]
    kernel = functools.partial(_gate_ro_conv_kernel, num_graphs=num_graphs)
    return pl.pallas_call(
        kernel,
        out_shape=(jax.ShapeDtypeStruct((num_graphs, 2 * NHID), jnp.float32),
                   jax.ShapeDtypeStruct((m, NHID), jnp.float32),
                   jax.ShapeDtypeStruct((m, 1), jnp.float32)),
        in_specs=[VMEM_SPEC] * 7,
        out_specs=(VMEM_SPEC,) * 3,
        compiler_params=CP,
    )(adj_bf, x_sel, s_sel,
      p["conv2_w"], p["conv2_b"].reshape(1, NHID),
      p["pool2_w"].reshape(1, NHID), p["pool2_b"].reshape(1, 1))


def gate_ro_mlp(x_sel, s_sel, ro1, ginfo, p, num_graphs):
    w1a = p["lin1_w"][:2 * NHID]                  # [2H, H]
    w1b = p["lin1_w"][2 * NHID:]                  # [10, H]
    pad = LANE - NUM_CLASSES
    w3p = jnp.pad(p["lin3_w"], ((0, 0), (0, pad)))
    b3p = jnp.pad(p["lin3_b"], ((0, pad),), constant_values=-1e30).reshape(1, LANE)
    kernel = functools.partial(_gate_ro_mlp_kernel, num_graphs=num_graphs)
    out = pl.pallas_call(
        kernel,
        out_shape=jax.ShapeDtypeStruct((num_graphs, LANE), jnp.float32),
        in_specs=[VMEM_SPEC] * 11,
        out_specs=VMEM_SPEC,
        compiler_params=CP,
    )(x_sel, s_sel, ro1, ginfo,
      w1a, w1b, p["lin1_b"].reshape(1, NHID),
      p["lin2_w"], p["lin2_b"].reshape(1, NHID // 2),
      w3p, b3p)
    return out[:, :NUM_CLASSES]


# ------------------------------- JAX glue --------------------------------------

def topk_perm(score, num_graphs, ratio):
    # per-graph top-k (data-dependent selection -> XLA glue)
    n = score.shape[0]
    npg = n // num_graphs                          # equal-size graphs, contiguous blocks
    k = math.ceil(ratio * npg)
    local = jnp.argsort(-score.reshape(num_graphs, npg), axis=1)[:, :k]
    return (local + npg * jnp.arange(num_graphs)[:, None]).reshape(-1)


def net_forward(params, x, adj, ginfo, num_graphs):
    adj_bf = adj.astype(jnp.bfloat16)              # exact for 0/1 adjacency; halves HBM/VMEM
    # conv1 + relu + pool1 score (one fused kernel, in-kernel GCN normalization)
    h1, s1 = conv1_pool1(adj_bf, x, params)
    perm1 = topk_perm(s1[:, 0], num_graphs, POOL_RATIO)
    # TODO(synk): perm gathers stay in XLA; an in-kernel scalar-prefetch gather
    # (PrefetchScalarGridSpec + pl.Element) would remove these O(N^2) passes.
    adj1_bf = adj_bf[perm1][:, perm1]              # == filter_adj on dense adjacency
    # pool1 gating + readout1 + conv2 + relu + pool2 score (one fused kernel)
    ro1, h2, s2 = gate_ro_conv2_pool2(adj1_bf, h1[perm1], s1[perm1], params, num_graphs)
    perm2 = topk_perm(s2[:, 0], num_graphs, POOL_RATIO)
    # pool2 gating + readout2 + (x1+x2, ginfo) + MLP head + log_softmax (one fused kernel)
    return gate_ro_mlp(h2[perm2], s2[perm2], ro1, ginfo, params, num_graphs)


# ------------------------------ parameter init ---------------------------------

def init_params(key):
    def dense(k, shape, scale=0.1):
        return (scale * jax.random.normal(k, shape)).astype(jnp.float32)

    ks = jax.random.split(key, 16)
    lin1_in = NHID * 2 + 10
    return {
        "conv1_w": dense(ks[0], (NUM_FEATURES, NHID)),
        "conv1_b": jnp.zeros((NHID,), jnp.float32),
        "pool1_w": dense(ks[1], (NHID, 1)),
        "pool1_b": jnp.zeros((1,), jnp.float32),
        "conv2_w": dense(ks[2], (NHID, NHID)),
        "conv2_b": jnp.zeros((NHID,), jnp.float32),
        "pool2_w": dense(ks[3], (NHID, 1)),
        "pool2_b": jnp.zeros((1,), jnp.float32),
        # conv3 / pool3 exist in __init__ but are unused in forward.
        "lin1_w": dense(ks[4], (lin1_in, NHID)),
        "lin1_b": jnp.zeros((NHID,), jnp.float32),
        "lin2_w": dense(ks[5], (NHID, NHID // 2)),
        "lin2_b": jnp.zeros((NHID // 2,), jnp.float32),
        "lin3_w": dense(ks[6], (NHID // 2, NUM_CLASSES)),
        "lin3_b": jnp.zeros((NUM_CLASSES,), jnp.float32),
    }


# --------------------------------- example --------------------------------------

def build_example(key, num_graphs=2, nodes_per_graph=16):
    kx, kg = jax.random.split(key, 2)
    n = num_graphs * nodes_per_graph
    x = jax.random.normal(kx, (n, NUM_FEATURES), jnp.float32)
    # dense symmetric adjacency: a ring within each graph (no cross-graph edges)
    offs = jnp.arange(num_graphs)[:, None] * nodes_per_graph
    i = (offs + jnp.arange(nodes_per_graph)[None, :]).reshape(-1)
    j = (offs + (jnp.arange(nodes_per_graph)[None, :] + 1) % nodes_per_graph).reshape(-1)
    adj = jnp.zeros((n, n), jnp.float32).at[i, j].set(1.0).at[j, i].set(1.0)
    ginfo = jax.random.normal(kg, (num_graphs, 10), jnp.float32)
    return x, adj, ginfo


if __name__ == "__main__":
    key = jax.random.PRNGKey(0)
    kp, kd = jax.random.split(key)
    params = init_params(kp)
    x, adj, ginfo = build_example(kd, num_graphs=2, nodes_per_graph=16)

    out = net_forward(params, x, adj, ginfo, num_graphs=2)
    out = jax.block_until_ready(out)

    assert out.shape == (2, NUM_CLASSES)
    assert bool(jnp.all(jnp.isfinite(out)))
    # rows of log_softmax must (approximately) normalize to 1 in prob space
    assert bool(jnp.allclose(jnp.sum(jnp.exp(out), axis=-1), 1.0, atol=1e-4))
    print("KERNEL_OK")
</pallas_src>

<mosaic_0001>
module attributes {stable_mosaic.version = 11 : i64} {
  func.func @_conv1_score_kernel(%arg0: memref<32x32xbf16, #tpu.memory_space<vmem>>, %arg1: memref<32x1xf32, #tpu.memory_space<vmem>>, %arg2: memref<1x128xf32, #tpu.memory_space<vmem>>, %arg3: memref<1x128xf32, #tpu.memory_space<vmem>>, %arg4: memref<1x128xf32, #tpu.memory_space<vmem>>, %arg5: memref<1x1xf32, #tpu.memory_space<vmem>>, %arg6: memref<32x128xf32, #tpu.memory_space<vmem>>, %arg7: memref<32x1xf32, #tpu.memory_space<vmem>>) attributes {dimension_semantics = [], scalar_prefetch = 0 : i64, scratch_operands = 0 : i64, tpu.core_type = #tpu.core_type<tc>} {
    %0 = tpu.iota {dimensions = array<i32: 0>} : vector<32x32xi32>
    %1 = tpu.iota {dimensions = array<i32: 1>} : vector<32x32xi32>
    %2 = arith.cmpi eq, %0, %1 : vector<32x32xi32>
    %c0 = arith.constant 0 : index
    %c0_0 = arith.constant 0 : index
    %3 = vector.load %arg0[%c0, %c0_0] : memref<32x32xbf16, #tpu.memory_space<vmem>>, vector<32x32xbf16>
    %4 = arith.extui %2 : vector<32x32xi1> to vector<32x32xi32>
    %5 = arith.sitofp %4 : vector<32x32xi32> to vector<32x32xf32>
    %6 = arith.truncf %5 : vector<32x32xf32> to vector<32x32xbf16>
    %7 = arith.addf %3, %6 : vector<32x32xbf16>
    %8 = arith.extf %7 : vector<32x32xbf16> to vector<32x32xf32>
    %cst = arith.constant dense<0.000000e+00> : vector<32xf32>
    %9 = vector.multi_reduction <add>, %8, %cst [1] : vector<32x32xf32> to vector<32xf32>
    %10 = vector.shape_cast %9 : vector<32xf32> to vector<32x1xf32>
    %11 = math.rsqrt %10 : vector<32x1xf32>
    %c0_1 = arith.constant 0 : index
    %c0_2 = arith.constant 0 : index
    %12 = vector.load %arg1[%c0_1, %c0_2] : memref<32x1xf32, #tpu.memory_space<vmem>>, vector<32x1xf32>
    %c0_3 = arith.constant 0 : index
    %c0_4 = arith.constant 0 : index
    %13 = vector.load %arg2[%c0_3, %c0_4] : memref<1x128xf32, #tpu.memory_space<vmem>>, vector<1x128xf32>
    %14 = vector.broadcast %12 : vector<32x1xf32> to vector<32x128xf32>
    %15 = vector.broadcast %13 : vector<1x128xf32> to vector<32x128xf32>
    %16 = arith.mulf %14, %15 : vector<32x128xf32>
    %17 = vector.broadcast %11 : vector<32x1xf32> to vector<32x128xf32>
    %18 = arith.mulf %17, %16 : vector<32x128xf32>
    %19 = arith.truncf %18 : vector<32x128xf32> to vector<32x128xbf16>
    %cst_5 = arith.constant dense<0.000000e+00> : vector<32x128xf32>
    %20 = tpu.matmul %7, %19, %cst_5 {dimension_numbers = #tpu.dot_dimension_numbers<[1], [0], [0], [1], [0, 0, 1, 1], [], []>} : vector<32x32xbf16>, vector<32x128xbf16>, vector<32x128xf32> -> vector<32x128xf32>
    %21 = vector.broadcast %11 : vector<32x1xf32> to vector<32x128xf32>
    %22 = arith.mulf %21, %20 : vector<32x128xf32>
    %c0_6 = arith.constant 0 : index
    %c0_7 = arith.constant 0 : index
    %23 = vector.load %arg3[%c0_6, %c0_7] : memref<1x128xf32, #tpu.memory_space<vmem>>, vector<1x128xf32>
    %24 = vector.broadcast %23 : vector<1x128xf32> to vector<32x128xf32>
    %25 = arith.addf %22, %24 : vector<32x128xf32>
    %cst_8 = arith.constant 0.000000e+00 : f32
    %26 = vector.broadcast %cst_8 : f32 to vector<32x128xf32>
    %27 = arith.maximumf %25, %26 : vector<32x128xf32>
    %c0_9 = arith.constant 0 : index
    %c0_10 = arith.constant 0 : index
    %28 = vector.load %arg6[%c0_9, %c0_10] : memref<32x128xf32, #tpu.memory_space<vmem>>, vector<32x128xf32>
    tpu.vector_store %arg6[%c0_9, %c0_10], %27 {strides = array<i32>} : memref<32x128xf32, #tpu.memory_space<vmem>>, vector<32x128xf32>,
    %c0_11 = arith.constant 0 : index
    %c0_12 = arith.constant 0 : index
    %29 = vector.load %arg4[%c0_11, %c0_12] : memref<1x128xf32, #tpu.memory_space<vmem>>, vector<1x128xf32>
    %30 = vector.broadcast %29 : vector<1x128xf32> to vector<32x128xf32>
    %31 = arith.mulf %27, %30 : vector<32x128xf32>
    %cst_13 = arith.constant dense<0.000000e+00> : vector<32xf32>
    %32 = vector.multi_reduction <add>, %31, %cst_13 [1] : vector<32x128xf32> to vector<32xf32>
    %33 = vector.shape_cast %32 : vector<32xf32> to vector<32x1xf32>
    %34 = arith.mulf %11, %33 : vector<32x1xf32>
    %35 = arith.truncf %34 : vector<32x1xf32> to vector<32x1xbf16>
    %cst_14 = arith.constant dense<0.000000e+00> : vector<32x1xf32>
    %36 = tpu.matmul %7, %35, %cst_14 {dimension_numbers = #tpu.dot_dimension_numbers<[1], [0], [0], [1], [0, 0, 1, 1], [], []>} : vector<32x32xbf16>, vector<32x1xbf16>, vector<32x1xf32> -> vector<32x1xf32>
    %37 = arith.mulf %11, %36 : vector<32x1xf32>
    %c0_15 = arith.constant 0 : index
    %c0_16 = arith.constant 0 : index
    %38 = vector.load %arg5[%c0_15, %c0_16] : memref<1x1xf32, #tpu.memory_space<vmem>>, vector<1x1xf32>
    %39 = vector.broadcast %38 : vector<1x1xf32> to vector<32x1xf32>
    %40 = arith.addf %37, %39 : vector<32x1xf32>
    %c0_17 = arith.constant 0 : index
    %c0_18 = arith.constant 0 : index
    %41 = vector.load %arg7[%c0_17, %c0_18] : memref<32x1xf32, #tpu.memory_space<vmem>>, vector<32x1xf32>
    tpu.vector_store %arg7[%c0_17, %c0_18], %40 {strides = array<i32>} : memref<32x1xf32, #tpu.memory_space<vmem>>, vector<32x1xf32>,
    return
  }
}

</mosaic_0001>

<bundles_post_ra>
// kernel: tpu_custom_call.1
= control target key start
LH: loop header
LB: loop body
LE: loop exit
PB: predicated region body
PF: predicated region fallthrough
CT: control target
= control target key end

     0   :  { %s836_s0 = inlined_call_operand.hbm [shape: bf16[32,32], index: 0, kind: input, shape index: {}]   ;;  %s837_s1 = inlined_call_operand.hbm [shape: f32[32,1], index: 1, kind: input, shape index: {}]   ;;  %s838_s2 = inlined_call_operand.hbm [shape: f32[1,128], index: 2, kind: input, shape index: {}]   ;;  %s839_s3 = inlined_call_operand.hbm [shape: f32[1,128], index: 3, kind: input, shape index: {}]   ;;  %s840_s4 = inlined_call_operand.hbm [shape: f32[1,128], index: 4, kind: input, shape index: {}]   ;;  %s841_s5 = inlined_call_operand.<no memory space> [shape: f32[1,1], index: 5, kind: input, shape index: {}]   ;;  %s842_s6 = inlined_call_operand.hbm [shape: f32[32,128], index: 6, kind: output, shape index: {0}]   ;;  %s843_s7 = inlined_call_operand.hbm [shape: f32[32,1], index: 7, kind: output, shape index: {1}]  }
   0x1   :  { %v13_v0 = vstv %s841_s5 }
   0x2   :  { %14 = vst [vmem:[#allocation2] sm:$0x1] %v13_v0 }
   0x3   :  { %15 = vsyncpa [#allocation4], 0 }
   0x4   :  { %16 = vsyncpa [#allocation7], 0 }
   0x5   :  { %17 = vsyncpa [#allocation10], 0 }
   0x6   :  { %18 = vsyncpa [#allocation5], 0 }
   0x7   :  { %19 = vsyncpa [#allocation14], 0  ;;  %s647_s26 = smov [#allocation6]   ;;  %s483_s30 = scalar_lea.hbm %s837_s1, 512 }
   0x8   :  { %s37_s27 = sshll.u32 %s647_s26, 4  ;;  %p484_p0 = scmp.ne.s32.totalorder %s837_s1, %s483_s30  ;;  %s38_s27 = int_to_ptr.vmem [resolvable:$true] %s37_s27 }
   0x9   :  { %p487_p1 = scmp.lt.u32.totalorder %s483_s30, %s837_s1 }
   0xb   :  { %p489_p2 = pnand %p487_p1, %p484_p0 }
   0xd   :  { %492 = shalt.err (!%p489_p2)
}
   0xe   :  { %s493_s5 = scalar_lea.vmem %s38_s27, 512  ;;  %p498_p4 = scmp.lt.s32.totalorder %s38_s27, %s38_s27 }
   0xf   :  { %p494_p3 = scmp.ne.s32.totalorder %s38_s27, %s493_s5  ;;  %p499_p5 = scmp.lt.s32.totalorder %s493_s5, %s493_s5 }
  0x11   :  { %p500_p6 = por %p499_p5, %p498_p4 }
  0x13   :  { %p501_p7 = pnand %p500_p6, %p494_p3 }
  0x15   :  { %504 = shalt.err (!%p501_p7)
}
  0x16   :  { %s648_s12 = smov 128   ;;  %s649_s13 = smov 8  }
  0x17   :  { %43 = dma.hbm_to_vmem [thread:$0]  %s837_s1, 512, %s38_s27, [#allocation7], %s648_s12, %s648_s12, %s649_s13  }
  0x18   :  { %s650_s16 = smov [#allocation9]   ;;  %s651_s18 = smov [#allocation3]  }
  0x19   :  { %s60_s17 = sshll.u32 %s650_s16, 4  ;;  %s25_s19 = sshll.u32 %s651_s18, 4  ;;  %s61_s17 = int_to_ptr.vmem [resolvable:$true] %s60_s17  ;;  %s26_s19 = int_to_ptr.vmem [resolvable:$true] %s25_s19 }
  0x1a   :  { %s505_s22 = scalar_lea.hbm %s839_s3, 16 }
  0x1b   :  { %p506_p8 = scmp.ne.s32.totalorder %s839_s3, %s505_s22  ;;  %p509_p9 = scmp.lt.u32.totalorder %s505_s22, %s839_s3 }
  0x1d   :  { %p511_p10 = pnand %p509_p9, %p506_p8 }
  0x1f   :  { %514 = shalt.err (!%p511_p10)
}
  0x20   :  { %s515_s1 = scalar_lea.vmem %s61_s17, 16  ;;  %s519_s27 = scalar_lea.vmem %s61_s17, 32 }
  0x21   :  { %p516_p11 = scmp.ne.s32.totalorder %s61_s17, %s515_s1  ;;  %p520_p12 = scmp.lt.s32.totalorder %s61_s17, %s61_s17 }
  0x22   :  { %p521_p13 = scmp.lt.s32.totalorder %s519_s27, %s515_s1 }
  0x24   :  { %p522_p0 = por %p521_p13, %p520_p12 }
  0x26   :  { %p523_p1 = pnand %p522_p0, %p516_p11 }
  0x28   :  { %526 = shalt.err (!%p523_p1)
}
  0x29   :  { %63 = dma.hbm_to_vmem [thread:$0]  %s839_s3, 16, %s61_s17, [#allocation10]  }
  0x2a   :  { %s527_s9 = scalar_lea.hbm %s836_s0, 256 }
  0x2b   :  { %p528_p2 = scmp.ne.s32.totalorder %s836_s0, %s527_s9  ;;  %p531_p3 = scmp.lt.u32.totalorder %s527_s9, %s836_s0 }
  0x2d   :  { %p533_p4 = pnand %p531_p3, %p528_p2 }
  0x2f   :  { %536 = shalt.err (!%p533_p4)
}
  0x30   :  { %s537_s15 = scalar_lea.vmem %s26_s19, 256  ;;  %p542_p6 = scmp.lt.s32.totalorder %s26_s19, %s26_s19 }
  0x31   :  { %p538_p5 = scmp.ne.s32.totalorder %s26_s19, %s537_s15  ;;  %p543_p7 = scmp.lt.s32.totalorder %s537_s15, %s537_s15 }
  0x33   :  { %p544_p8 = por %p543_p7, %p542_p6 }
  0x35   :  { %p545_p9 = pnand %p544_p8, %p538_p5 }
  0x37   :  { %548 = shalt.err (!%p545_p9)
}
  0x38   :  { %s652_s3 = smov 64   ;;  %s653_s16 = smov 4  }
  0x39   :  { %31 = dma.hbm_to_vmem [thread:$0]  %s836_s0, 256, %s26_s19, [#allocation4], %s652_s3, %s652_s3, %s653_s16  }
  0x3a   :  { %s654_s20 = smov [#allocation8]   ;;  %s655_s22 = smov [#allocation11]  }
  0x3b   :  { %s50_s21 = sshll.u32 %s654_s20, 4  ;;  %s70_s23 = sshll.u32 %s655_s22, 4  ;;  %s51_s21 = int_to_ptr.vmem [resolvable:$true] %s50_s21  ;;  %s71_s23 = int_to_ptr.vmem [resolvable:$true] %s70_s23 }
  0x3c   :  { %s549_s26 = scalar_lea.hbm %s838_s2, 16 }
  0x3d   :  { %p550_p10 = scmp.ne.s32.totalorder %s838_s2, %s549_s26  ;;  %p553_p11 = scmp.lt.u32.totalorder %s549_s26, %s838_s2 }
  0x3f   :  { %p555_p12 = pnand %p553_p11, %p550_p10 }
  0x41   :  { %558 = shalt.err (!%p555_p12)
}
  0x42   :  { %s559_s0 = scalar_lea.vmem %s51_s21, 16  ;;  %s563_s19 = scalar_lea.vmem %s51_s21, 32 }
  0x43   :  { %p560_p13 = scmp.ne.s32.totalorder %s51_s21, %s559_s0  ;;  %p564_p0 = scmp.lt.s32.totalorder %s51_s21, %s51_s21 }
  0x44   :  { %p565_p1 = scmp.lt.s32.totalorder %s563_s19, %s559_s0 }
  0x46   :  { %p566_p2 = por %p565_p1, %p564_p0 }
  0x48   :  { %p567_p3 = pnand %p566_p2, %p560_p13 }
  0x4a   :  { %570 = shalt.err (!%p567_p3)
}
  0x4b   :  { %53 = dma.hbm_to_vmem [thread:$0]  %s838_s2, 16, %s51_s21, [#allocation7]  }
  0x4c   :  { %s571_s11 = scalar_lea.hbm %s840_s4, 16 }
  0x4d   :  { %p572_p4 = scmp.ne.s32.totalorder %s840_s4, %s571_s11  ;;  %p575_p5 = scmp.lt.u32.totalorder %s571_s11, %s840_s4 }
  0x4f   :  { %p577_p6 = pnand %p575_p5, %p572_p4 }
  0x51   :  { %580 = shalt.err (!%p577_p6)
}
  0x52   :  { %s581_s16 = scalar_lea.vmem %s71_s23, 16  ;;  %s585_s17 = scalar_lea.vmem %s71_s23, 32 }
  0x53   :  { %p582_p7 = scmp.ne.s32.totalorder %s71_s23, %s581_s16  ;;  %p586_p8 = scmp.lt.s32.totalorder %s71_s23, %s71_s23 }
  0x54   :  { %p587_p9 = scmp.lt.s32.totalorder %s585_s17, %s581_s16 }
  0x56   :  { %p588_p10 = por %p587_p9, %p586_p8 }
  0x58   :  { %p589_p11 = pnand %p588_p10, %p582_p7 }
  0x5a   :  { %592 = shalt.err (!%p589_p11)
}
  0x5b   :  { %73 = dma.hbm_to_vmem [thread:$0]  %s840_s4, 16, %s71_s23, [#allocation10]  }
  0x5c   :  { %637 = dma.done.wait [#allocation4], 256  }
  0x5d   :  { %638 = vsyncadd [#allocation4], 4294967040 }
  0x5e   :  { %639 = dma.done.wait [#allocation7], 528  }
  0x5f   :  { %640 = vsyncadd [#allocation7], 4294966768 }
  0x60   :  { %641 = dma.done.wait [#allocation10], 32  }
  0x61   :  { %642 = vsyncadd [#allocation10], 4294967264  ;;  %v92_v1 = vlaneseq  ;;  %v656_v2 = vmov 0   ;;  %v657_v8 = vmov 0.0   ;;  %v103_v11 = vld [vmem:[#allocation3] sm:$0xf] }
  0x62   :  { %474 = vset.pattern.permute.xlu1 %v656_v2  ;;  %473 = vset.pattern.permute.xlu0 %v656_v2  ;;  %v105_v12 = vld [vmem:[#allocation3 + $0x8] sm:$0xf]  ;;  %v104_v17 = vld [vmem:[#allocation3 + $0x4] sm:$0xf]  ;;  %v106_v19 = vld [vmem:[#allocation3 + $0xc] sm:$0xf] }
  0x63   :  { %v93_v3 = vshrl.u32 %v92_v1, 7  ;;  %v98_v4 = vand.u32 127, %v92_v1  ;;  %vm139_vm4 = vcmask 261120   ;;  %v157_v34 = vld [vmem:[#allocation6 + $0x8] sm:$0xff]  ;;  %v156_v35 = vld [vmem:[#allocation6] sm:$0xff]  ;;  %v158_v36 = vld [vmem:[#allocation6 + $0x10] sm:$0xff] }
  0x64   :  { %v159_v37 = vld [vmem:[#allocation6 + $0x18] sm:$0xff]  ;;  %v422_v44 = vld [vmem:[#allocation8] ss:$0 sm:$0xff]  ;;  %v427_v63 = vld [vmem:[#allocation9] ss:$0 sm:$0xff]  ;;  %s658_s4 = smov [#allocation12]  }
  0x65   :  { %vm99_vm0 = vcmp.eq.s32.totalorder %v93_v3, %v98_v4  ;;  %v95_v5 = vadd.s32 16, %v93_v3  ;;  %v94_v6 = vadd.s32 8, %v93_v3  ;;  %v96_v7 = vadd.s32 24, %v93_v3  ;;  %s384_s20 = sshll.u32 %s658_s4, 4  ;;  %s385_s20 = int_to_ptr.vmem [resolvable:$true] %s384_s20 }
  0x66   :  { %v414_v9 = vsel %vm99_vm0, 1.0, %v657_v8  ;;  %s593_s21 = scalar_lea.vmem %s385_s20, 512  ;;  %p598_p13 = scmp.lt.s32.totalorder %s385_s20, %s385_s20 }
  0x67   :  { %v432_v10 = vpack.c.bf16 %v414_v9, %v414_v9  ;;  %vm101_vm1 = vcmp.eq.s32.totalorder %v95_v5, %v98_v4  ;;  %vm100_vm2 = vcmp.eq.s32.totalorder %v94_v6, %v98_v4  ;;  %vm102_vm3 = vcmp.eq.s32.totalorder %v96_v7, %v98_v4  ;;  %p594_p12 = scmp.ne.s32.totalorder %s385_s20, %s593_s21  ;;  %p599_p0 = scmp.lt.s32.totalorder %s593_s21, %s593_s21 }
  0x68   :  { %v416_v13 = vsel %vm101_vm1, 1.0, %v657_v8  ;;  %v415_v14 = vsel %vm100_vm2, 1.0, %v657_v8  ;;  %v417_v20 = vsel %vm102_vm3, 1.0, %v657_v8 }
  0x69   :  { %v131_v15 = vadd.bf16 %v432_v10, %v103_v11  ;;  %v434_v16 = vpack.c.bf16 %v416_v13, %v416_v13  ;;  %v433_v18 = vpack.c.bf16 %v415_v14, %v415_v14  ;;  %v435_v21 = vpack.c.bf16 %v417_v20, %v417_v20  ;;  %v428_v11 = vld [vmem:[#allocation11] ss:$0 sm:$0xff]  ;;  %p600_p1 = por %p599_p0, %p598_p13 }
  0x6b   :  { %v135_v22 = vunpack.c.l.bf16 %v131_v15  ;;  %v133_v23 = vadd.bf16 %v434_v16, %v105_v12  ;;  %v132_v24 = vadd.bf16 %v433_v18, %v104_v17  ;;  %v134_v25 = vadd.bf16 %v435_v21, %v106_v19  ;;  %p601_p2 = pnand %p600_p1, %p594_p12 }
  0x6d   :  { %v140_v26 = vsel %vm139_vm4, %v135_v22, 0.0  ;;  %v137_v27 = vunpack.c.l.bf16 %v133_v23  ;;  %v136_v28 = vunpack.c.l.bf16 %v132_v24  ;;  %v138_v29 = vunpack.c.l.bf16 %v134_v25 }
  0x6e   :  { %141 = vadd.xlane.f32.xlu0 %v140_v26  ;;  %v767_v30 = vcombine.low %v133_v23, %v134_v25  ;;  %v423_v38 = vcombine.low %v131_v15, %v132_v24 }
  0x6f   :  { %v146_v31 = vsel %vm139_vm4, %v137_v27, 0.0  ;;  %v143_v32 = vsel %vm139_vm4, %v136_v28, 0.0  ;;  %v149_v33 = vsel %vm139_vm4, %v138_v29, 0.0 }
  0x70   :  { %147 = vadd.xlane.f32.xlu1 %v146_v31  ;;  %448 = vmatprep.mubr.msk.bf16.mxu0 %vm139_vm4, %v423_v38 }
  0x71   :  { %456 = vmatprep.mubr.msk.bf16.mxu1 %vm139_vm4, %v423_v38 }
  0x72   :  { %144 = vadd.xlane.f32.xlu0 %v143_v32 }
  0x74   :  { %150 = vadd.xlane.f32.xlu1 %v149_v33 }
  0x85   :  { %168 = vperm.xlu1 %474, %v157_v34  }
  0x88   :  { %163 = vperm.xlu0 %473, %v156_v35  }
  0x89   :  { %173 = vperm.xlu1 %474, %v158_v36  }
  0x8d   :  { %178 = vperm.xlu1 %474, %v159_v37  }
  0xfb   :  { %v142_v39 = vpop.xlane.xlu0 %141 }
  0xfc   :  { %475 = vrsqrt.f32 %v142_v39 }
  0xfd   :  { %v148_v40 = vpop.xlane.xlu1 %147 }
  0xff   :  { %v145_v41 = vpop.xlane.xlu0 %144 }
 0x100   :  { %477 = vrsqrt.f32 %v145_v41 }
 0x101   :  { %v151_v42 = vpop.xlane.xlu1 %150  ;;  %479 = vrsqrt.f32 %v148_v40 }
 0x102   :  { %481 = vrsqrt.f32 %v151_v42 }
 0x105   :  { %v169_v43 = vpop.permute.xlu1 %168 }
 0x106   :  { %v774_v47 = vpop.eup %475  ;;  %v188_v48 = vmul.f32 %v422_v44, %v169_v43 }
 0x107   :  { %v164_v45 = vpop.permute.xlu0 %163 }
 0x108   :  { %v187_v46 = vmul.f32 %v422_v44, %v164_v45 }
 0x109   :  { %v174_v49 = vpop.permute.xlu1 %173 }
 0x10a   :  { %v776_v50 = vpop.eup %477  ;;  %v191_v51 = vmul.f32 %v774_v47, %v187_v46  ;;  %v189_v53 = vmul.f32 %v422_v44, %v174_v49 }
 0x10b   :  { %v192_v52 = vmul.f32 %v776_v50, %v188_v48  ;;  %v780_v56 = vpop.eup %479 }
 0x10c   :  { %v782_v58 = vpop.eup %481  ;;  %v193_v59 = vmul.f32 %v780_v56, %v189_v53 }
 0x10d   :  { %v179_v54 = vpop.permute.xlu1 %178  ;;  %v195_v55 = vpack.c.bf16 %v192_v52, %v191_v51 }
 0x10e   :  { %v190_v57 = vmul.f32 %v422_v44, %v179_v54 }
 0x10f   :  { %444 = vmatprep.subr.bf16.mxu0 %v195_v55 }
 0x110   :  { %v194_v60 = vmul.f32 %v782_v58, %v190_v57  ;;  %445 = vmatpush3.bf16.msra.mxu0 %v195_v55 }
 0x112   :  { %v196_v61 = vpack.c.bf16 %v194_v60, %v193_v59 }
 0x114   :  { %446 = vmatprep.subr.bf16.mxu0 %v196_v61 }
 0x115   :  { %447 = vmatpush3.bf16.msra.mxu0 %v196_v61 }
 0x118   :  { %449 = vmatmul.mubr.msk.bf16.vlgmr.msra.gmra.mrb[0].mxu0 %vm139_vm4, %v767_v30 }
 0x1eb   :  { %v450_v62 = vpop.f32.mrb[0].mxu0 }
 0x1ec   :  { %v264_v0 = vmul.f32 %v780_v56, %v450_v62  ;;  %v247_v1 = vpop.f32.mrb[1].mxu0 }
 0x1ed   :  { %v262_v2 = vmul.f32 %v774_v47, %v247_v1  ;;  %v451_v3 = vpop.f32.mrb[2].mxu0 }
 0x1ee   :  { %v275_v4 = vadd.f32 %v427_v63, %v264_v0  ;;  %v265_v5 = vmul.f32 %v782_v58, %v451_v3  ;;  %v250_v6 = vpop.f32.mrb[3].mxu0 }
 0x1ef   :  { %v273_v7 = vadd.f32 %v427_v63, %v262_v2  ;;  %v263_v8 = vmul.f32 %v776_v50, %v250_v6 }
 0x1f0   :  { %v279_v9 = vmax.f32 %v275_v4, 0.0  ;;  %v276_v10 = vadd.f32 %v427_v63, %v265_v5 }
 0x1f1   :  { %v277_v12 = vmax.f32 %v273_v7, 0.0  ;;  %v274_v13 = vadd.f32 %v427_v63, %v263_v8 }
 0x1f2   :  { %283 = vst [vmem:[#allocation12 + $0x10] sm:$0xff] %v279_v9  ;;  %v280_v14 = vmax.f32 %v276_v10, 0.0  ;;  %v294_v18 = vmul.f32 %v428_v11, %v279_v9 }
 0x1f3   :  { %281 = vst [vmem:[#allocation12] sm:$0xff] %v277_v12  ;;  %v278_v15 = vmax.f32 %v274_v13, 0.0  ;;  %v292_v16 = vmul.f32 %v428_v11, %v277_v12 }
 0x1f4   :  { %284 = vst [vmem:[#allocation12 + $0x18] sm:$0xff] %v280_v14  ;;  %v295_v19 = vmul.f32 %v428_v11, %v280_v14 }
 0x1f5   :  { %282 = vst [vmem:[#allocation12 + $0x8] sm:$0xff] %v278_v15  ;;  %296 = vadd.xlane.f32.xlu1 %v292_v16  ;;  %v293_v17 = vmul.f32 %v428_v11, %v278_v15 }
 0x1f7   :  { %298 = vadd.xlane.f32.xlu0 %v293_v17 }
 0x1f9   :  { %300 = vadd.xlane.f32.xlu1 %v294_v18 }
 0x1fd   :  { %302 = vadd.xlane.f32.xlu1 %v295_v19 }
 0x282   :  { %v297_v20 = vpop.xlane.xlu1 %296 }
 0x283   :  { %v304_v22 = vmul.f32 %v774_v47, %v297_v20 }
 0x284   :  { %v299_v21 = vpop.xlane.xlu0 %298 }
 0x285   :  { %v305_v23 = vmul.f32 %v776_v50, %v299_v21 }
 0x286   :  { %v301_v24 = vpop.xlane.xlu1 %300 }
 0x287   :  { %v308_v25 = vpack.c.bf16 %v305_v23, %v304_v22  ;;  %v306_v27 = vmul.f32 %v780_v56, %v301_v24 }
 0x289   :  { %452 = vmatprep.subr.bf16.mxu1 %v308_v25 }
 0x28a   :  { %v303_v26 = vpop.xlane.xlu1 %302  ;;  %453 = vmatpush3.bf16.msra.mxu1 %v308_v25 }
 0x28b   :  { %v307_v28 = vmul.f32 %v782_v58, %v303_v26 }
 0x28d   :  { %v309_v29 = vpack.c.bf16 %v307_v28, %v306_v27 }
 0x28f   :  { %454 = vmatprep.subr.bf16.mxu1 %v309_v29 }
 0x290   :  { %455 = vmatpush3.bf16.msra.mxu1 %v309_v29 }
 0x293   :  { %457 = vmatmul.mubr.msk.bf16.vlgmr.msra.gmra.mrb[0].mxu1 %vm139_vm4, %v767_v30 }
 0x294   :  { %604 = shalt.err (!%p601_p2)
}
 0x295   :  { %s605_s24 = scalar_lea.hbm %s842_s6, 512 }
 0x296   :  { %p606_p3 = scmp.ne.s32.totalorder %s842_s6, %s605_s24  ;;  %p609_p4 = scmp.lt.u32.totalorder %s605_s24, %s842_s6 }
 0x298   :  { %p611_p5 = pnand %p609_p4, %p606_p3 }
 0x29a   :  { %614 = shalt.err (!%p611_p5)
}
 0x29b   :  { %390 = dma.vmem_to_hbm [thread:$0]  %s385_s20, 512, %s842_s6, [#allocation5], %s648_s12, %s648_s12, %s649_s13   ;;  %v431_v31 = vld [vmem:[#allocation2] ss:$0 sm:$0xff]  ;;  %vm374_vm5 = vcmask 7168  }
 0x29c   :  { %s659_s0 = smov [#allocation13]  }
 0x29d   :  { %s396_s19 = sshll.u32 %s659_s0, 4  ;;  %s397_s19 = int_to_ptr.vmem [resolvable:$true] %s396_s19 }
 0x29e   :  { %s615_s6 = scalar_lea.vmem %s397_s19, 512  ;;  %p620_p7 = scmp.lt.s32.totalorder %s397_s19, %s397_s19 }
 0x29f   :  { %p616_p6 = scmp.ne.s32.totalorder %s397_s19, %s615_s6  ;;  %p621_p8 = scmp.lt.s32.totalorder %s615_s6, %s615_s6 }
 0x2a1   :  { %p622_p9 = por %p621_p8, %p620_p7 }
 0x2a3   :  { %p623_p10 = pnand %p622_p9, %p616_p6 }
 0x366   :  { %v458_v30 = vpop.f32.mrb[0].mxu1 }
 0x367   :  { %v361_v32 = vmul.f32 %v780_v56, %v458_v30  ;;  %v344_v33 = vpop.f32.mrb[1].mxu1 }
 0x368   :  { %v359_v34 = vmul.f32 %v774_v47, %v344_v33  ;;  %v459_v35 = vpop.f32.mrb[2].mxu1 }
 0x369   :  { %v372_v36 = vadd.f32 %v431_v31, %v361_v32  ;;  %v362_v37 = vmul.f32 %v782_v58, %v459_v35  ;;  %v347_v38 = vpop.f32.mrb[3].mxu1 }
 0x36a   :  { %v370_v39 = vadd.f32 %v431_v31, %v359_v34  ;;  %v360_v40 = vmul.f32 %v776_v50, %v347_v38 }
 0x36b   :  { %377 = vst.msk [vmem:[#allocation13 + $0x10] sm:$0xff] %vm374_vm5, %v372_v36  ;;  %v373_v41 = vadd.f32 %v431_v31, %v362_v37 }
 0x36c   :  { %375 = vst.msk [vmem:[#allocation13] sm:$0xff] %vm374_vm5, %v370_v39  ;;  %v371_v42 = vadd.f32 %v431_v31, %v360_v40 }
 0x36d   :  { %378 = vst.msk [vmem:[#allocation13 + $0x18] sm:$0xff] %vm374_vm5, %v373_v41 }
 0x36e   :  { %376 = vst.msk [vmem:[#allocation13 + $0x8] sm:$0xff] %vm374_vm5, %v371_v42 }
 0x36f   :  { %626 = shalt.err (!%p623_p10)
}
 0x370   :  { %s627_s9 = scalar_lea.hbm %s843_s7, 512 }
 0x371   :  { %p628_p11 = scmp.ne.s32.totalorder %s843_s7, %s627_s9  ;;  %p631_p12 = scmp.lt.u32.totalorder %s627_s9, %s843_s7 }
 0x373   :  { %p633_p13 = pnand %p631_p12, %p628_p11 }
 0x375   :  { %636 = shalt.err (!%p633_p13)
}
 0x376   :  { %402 = dma.vmem_to_hbm [thread:$0]  %s397_s19, 512, %s843_s7, [#allocation14], %s648_s12, %s648_s12, %s649_s13  }
 0x377   :  { %643 = dma.done.wait [#allocation5], 512  }
 0x378   :  { %644 = vsyncadd [#allocation5], 4294966784 }
 0x379   :  { %645 = dma.done.wait [#allocation14], 512  }
 0x37a   :  { %646 = vsyncadd [#allocation14], 4294966784 }
 0x37b   :  { %409 = vsyncpa [#allocation4], 1 }
 0x37c   :  { %410 = vsyncpa [#allocation7], 1 }
 0x37d   :  { %411 = vsyncpa [#allocation10], 1 }
 0x37e   :  { %412 = vsyncpa [#allocation5], 1 }
 0x37f   :  { %413 = vsyncpa [#allocation14], 1 }

</bundles_post_ra>
